<compile_context>
chip_gen: v5e
topology: v5e:2x2
jax: 0.10.0
libtpu: 0.0.40
codegen_flags: <defaults>
</compile_context>

<pallas_src>
import functools
import math

import jax
import jax.numpy as jnp
from jax import lax
from jax.experimental import pallas as pl
from jax.experimental.pallas import tpu as pltpu


def _tpu_defaults():
    """Generation-dependent VMEM budget, tile targets and softmax-exp dtype."""
    kind = ""
    try:
        kind = jax.devices()[0].device_kind.lower()
    except Exception:
        pass
    is_v7 = "v7" in kind
    is_v6 = "v6" in kind
    is_v5e = ("v5e" in kind) or ("v5 lite" in kind) or ("v5lite" in kind)
    if is_v7:
        # 64 MiB physical VMEM per TC: keep double-buffering headroom.
        vmem_limit, tq_target, tm_target = 48 << 20, 256, 256
    elif is_v6 or is_v5e:
        # 128 MiB physical VMEM: big tiles reach ~85% of the HBM roofline.
        vmem_limit, tq_target, tm_target = 96 << 20, 512, 512
    else:
        vmem_limit, tq_target, tm_target = 48 << 20, 256, 512
    # v6e/v7x EUP has a bf16 path (softmax exp is the saturating slot for
    # head_dim <= 128); v5e would just up-convert, so keep f32 exp there.
    bf16_exp = is_v6 or is_v7
    return vmem_limit, tq_target, tm_target, bf16_exp


def _pick_tile(n, target, granule):
    """Largest divisor of n that is <= target and a multiple of granule.

    Falls back to the full dimension (always correct; may be large for
    awkward/prime sizes — acceptable for the shapes this module is used at).
    """
    if n <= target:
        return n
    t = (target // granule) * granule
    while t >= granule:
        if n % t == 0:
            return t
        t -= granule
    return n


def _const_spec(block_shape):
    """Single-buffered BlockSpec for blocks whose index never changes (weights)."""
    nd = len(block_shape)
    index_map = lambda *_: (0,) * nd
    try:
        return pl.BlockSpec(block_shape, index_map, pipeline_mode=pl.Buffered(1))
    except Exception:
        # Older JAX without pipeline_mode: default double buffering (still
        # correct, slightly more VMEM).
        return pl.BlockSpec(block_shape, index_map)


# ---------------------------------------------------------------------------
# Kernel 1a: linear projection written directly in head-split layout
#   (B, S, H) @ (H, H) + b  ->  (B, n_heads, S, head_dim) bf16
# ---------------------------------------------------------------------------
def _proj_heads_kernel(x_ref, w_ref, b_ref, o_ref, *, n_heads, head_dim):
    acc = jnp.dot(x_ref[0].astype(jnp.bfloat16), w_ref[...],
                  preferred_element_type=jnp.float32) + b_ref[...]
    acc = acc.astype(o_ref.dtype)
    for h in range(n_heads):                       # static slices: zero cost
        o_ref[0, h] = acc[:, h * head_dim:(h + 1) * head_dim]


def _proj_heads(x, w_t, b, *, n_heads, head_dim, tm_target, vmem_limit):
    B, S, H = x.shape
    tm = _pick_tile(S, tm_target, 16)
    kernel = functools.partial(_proj_heads_kernel,
                               n_heads=n_heads, head_dim=head_dim)
    # TODO(synk): for H >= ~4096 on v7x, add N/K grid axes instead of holding
    # the full (H, H) weight resident in VMEM.
    return pl.pallas_call(
        kernel,
        out_shape=jax.ShapeDtypeStruct((B, n_heads, S, head_dim), jnp.bfloat16),
        grid_spec=pltpu.PrefetchScalarGridSpec(
            num_scalar_prefetch=0,
            grid=(B, S // tm),
            in_specs=[
                pl.BlockSpec((1, tm, H), lambda b, i: (b, i, 0)),
                _const_spec((H, H)),
                _const_spec((1, H)),
            ],
            out_specs=pl.BlockSpec((1, n_heads, tm, head_dim),
                                   lambda b, i: (b, 0, i, 0)),
        ),
        compiler_params=pltpu.CompilerParams(
            dimension_semantics=("parallel", "parallel"),
            vmem_limit_bytes=vmem_limit),
    )(x, w_t, b)


# ---------------------------------------------------------------------------
# Kernel 1b: fused QKV projection for self-attention (one activation read)
# ---------------------------------------------------------------------------
def _qkv_fused_kernel(x_ref, w_ref, b_ref, q_ref, k_ref, v_ref,
                      *, n_heads, head_dim):
    H = n_heads * head_dim
    acc = jnp.dot(x_ref[0].astype(jnp.bfloat16), w_ref[...],
                  preferred_element_type=jnp.float32) + b_ref[...]
    acc = acc.astype(q_ref.dtype)
    for h in range(n_heads):
        lo = h * head_dim
        q_ref[0, h] = acc[:, lo:lo + head_dim]
        k_ref[0, h] = acc[:, H + lo:H + lo + head_dim]
        v_ref[0, h] = acc[:, 2 * H + lo:2 * H + lo + head_dim]


def _qkv_fused(x, w_qkv_t, b_qkv, *, n_heads, head_dim, tm_target, vmem_limit):
    B, S, H = x.shape
    tm = _pick_tile(S, tm_target, 16)
    kernel = functools.partial(_qkv_fused_kernel,
                               n_heads=n_heads, head_dim=head_dim)
    hs_shape = jax.ShapeDtypeStruct((B, n_heads, S, head_dim), jnp.bfloat16)
    hs_spec = pl.BlockSpec((1, n_heads, tm, head_dim), lambda b, i: (b, 0, i, 0))
    return pl.pallas_call(
        kernel,
        out_shape=(hs_shape, hs_shape, hs_shape),
        grid_spec=pltpu.PrefetchScalarGridSpec(
            num_scalar_prefetch=0,
            grid=(B, S // tm),
            in_specs=[
                pl.BlockSpec((1, tm, H), lambda b, i: (b, i, 0)),
                _const_spec((H, 3 * H)),
                _const_spec((1, 3 * H)),
            ],
            out_specs=[hs_spec, hs_spec, hs_spec],
        ),
        compiler_params=pltpu.CompilerParams(
            dimension_semantics=("parallel", "parallel"),
            vmem_limit_bytes=vmem_limit),
    )(x, w_qkv_t, b_qkv)


# ---------------------------------------------------------------------------
# Kernel 2: attention core (per batch, per q-tile) + fused output projection
# ---------------------------------------------------------------------------
def _attn_kernel(q_ref, k_ref, v_ref, mask_ref, wo_ref, bo_ref,
                 x_ref, attn_ref, *, n_heads, bf16_exp):
    # Additive mask bias, computed once per (batch, q-tile) step.
    m = mask_ref[0, 0].astype(jnp.float32)                        # (TQ, Sk)
    neg = jnp.where(m == 0.0, jnp.float32(-1e10), jnp.float32(0.0))

    tq, H = x_ref.shape[1], x_ref.shape[2]
    # Output projection accumulates per head into the VMEM output block;
    # seed it with the bias (broadcast hoisted out of the head loop).
    x_ref[0] = jnp.broadcast_to(bo_ref[...], (tq, H))

    def head_body(h, carry):
        qh = q_ref[0, h]                         # (TQ, d) bf16, pre-scaled
        kh = k_ref[0, h]                         # (Sk, d) bf16
        vh = v_ref[0, h]                         # (Sk, d) bf16

        # energy = (Q / sqrt(d)) K^T: contract last axes, no explicit transpose.
        energy = lax.dot_general(
            qh, kh, (((1,), (1,)), ((), ())),
            preferred_element_type=jnp.float32) + neg             # (TQ, Sk)

        # Numerically-stable softmax; exp on EUP (bf16 path on v6e/v7x),
        # max/row-sum in f32, denominator via approx reciprocal.
        mx = jnp.max(energy, axis=-1, keepdims=True)
        z = energy - mx
        if bf16_exp:
            e = jnp.exp(z.astype(jnp.bfloat16)).astype(jnp.float32)
        else:
            e = jnp.exp(z)
        s = jnp.sum(e, axis=-1, keepdims=True)
        p = (e * pl.reciprocal(s, approx=True)).astype(jnp.bfloat16)

        attn_ref[0, h] = p                       # bf16 writeback (halves HBM)
        # dropout(p) is identity in eval mode.
        pv = jnp.dot(p, vh, preferred_element_type=jnp.float32)   # (TQ, d)
        # Fold this head's slice of the output projection: no merged-head
        # scratch, no lane-masked narrow ctx stores.
        x_ref[0] += jnp.dot(pv.astype(jnp.bfloat16), wo_ref[h],
                            preferred_element_type=jnp.float32)
        return carry

    lax.fori_loop(0, n_heads, head_body, 0)


def multi_head_attention(query, key, value, params, *, n_heads, mask=None):
    """Reproduces MultiHeadAttentionLayer.forward (eval mode).

    Returns (x: f32 (B, Sq, H), attention: bf16 (B, n_heads, Sq, Sk)).
    mask (if given) must be broadcastable to (B, 1, Sq, Sk); nonzero = keep.
    """
    B, Sq, H = query.shape
    Sk = key.shape[1]
    assert H % n_heads == 0
    head_dim = H // n_heads
    inv_scale = 1.0 / math.sqrt(head_dim)

    bf16, f32 = jnp.bfloat16, jnp.float32
    vmem_limit, tq_target, tm_target, bf16_exp = _tpu_defaults()

    # nn.Linear computes x @ W^T + b: pre-transpose weights to (in, out).
    # Fold the 1/sqrt(head_dim) scale into the Q projection.
    wq_t = (params["wq"].T * inv_scale).astype(bf16)
    wk_t = params["wk"].T.astype(bf16)
    wv_t = params["wv"].T.astype(bf16)
    bq = (params["bq"] * inv_scale).reshape(1, H).astype(f32)
    bk = params["bk"].reshape(1, H).astype(f32)
    bv = params["bv"].reshape(1, H).astype(f32)
    # Wo^T in head-major layout so the attention kernel folds each head's
    # context into the output projection via a leading-axis index.
    wo_h = params["wo"].T.reshape(n_heads, head_dim, H).astype(bf16)
    bo = params["bo"].reshape(1, H).astype(f32)

    # 1) Projections, written directly in head-split (B, nH, S, d) bf16 layout
    #    (no wrapper-side reshape/transpose HBM round-trips).
    if (query is key) and (key is value):
        # Self-attention: read the activations once, 3x-wider MXU N per tile.
        w_qkv = jnp.concatenate([wq_t, wk_t, wv_t], axis=1)        # (H, 3H)
        b_qkv = jnp.concatenate([bq, bk, bv], axis=1)              # (1, 3H)
        qh, kh, vh = _qkv_fused(query, w_qkv, b_qkv, n_heads=n_heads,
                                head_dim=head_dim, tm_target=tm_target,
                                vmem_limit=vmem_limit)
    else:
        qh = _proj_heads(query, wq_t, bq, n_heads=n_heads, head_dim=head_dim,
                         tm_target=tm_target, vmem_limit=vmem_limit)
        kh = _proj_heads(key, wk_t, bk, n_heads=n_heads, head_dim=head_dim,
                         tm_target=tm_target, vmem_limit=vmem_limit)
        vh = _proj_heads(value, wv_t, bv, n_heads=n_heads, head_dim=head_dim,
                         tm_target=tm_target, vmem_limit=vmem_limit)

    # int8 mask (4x less HBM traffic than f32).
    if mask is None:
        mask_i8 = jnp.ones((B, 1, Sq, Sk), jnp.int8)
    else:
        mask_i8 = (jnp.broadcast_to(mask, (B, 1, Sq, Sk)) != 0).astype(jnp.int8)

    tq = _pick_tile(Sq, tq_target, 16)
    n_qt = Sq // tq
    kernel = functools.partial(_attn_kernel, n_heads=n_heads, bf16_exp=bf16_exp)

    # TODO(synk): for very large H / Sk on v7x (64 MiB VMEM), move n_heads into
    # the grid (K/V block (1,1,Sk,d), head axis 'arbitrary') to divide K/V and
    # attn VMEM by n_heads.
    x, attn = pl.pallas_call(
        kernel,
        out_shape=(
            jax.ShapeDtypeStruct((B, Sq, H), f32),
            jax.ShapeDtypeStruct((B, n_heads, Sq, Sk), bf16),
        ),
        grid_spec=pltpu.PrefetchScalarGridSpec(
            num_scalar_prefetch=0,
            grid=(B, n_qt),
            in_specs=[
                pl.BlockSpec((1, n_heads, tq, head_dim), lambda b, q: (b, 0, q, 0)),
                pl.BlockSpec((1, n_heads, Sk, head_dim), lambda b, q: (b, 0, 0, 0)),
                pl.BlockSpec((1, n_heads, Sk, head_dim), lambda b, q: (b, 0, 0, 0)),
                pl.BlockSpec((1, 1, tq, Sk), lambda b, q: (b, 0, q, 0)),
                _const_spec((n_heads, head_dim, H)),   # Wo^T head-major, bf16
                _const_spec((1, H)),                   # bo, f32
            ],
            out_specs=[
                pl.BlockSpec((1, tq, H), lambda b, q: (b, q, 0)),
                pl.BlockSpec((1, n_heads, tq, Sk), lambda b, q: (b, 0, q, 0)),
            ],
        ),
        # Batch axis 'parallel', q-tile axis 'arbitrary': on megacore parts
        # the TensorCores split on batch, so K/V blocks are never fetched
        # twice for the same batch.
        compiler_params=pltpu.CompilerParams(
            dimension_semantics=("parallel", "arbitrary"),
            vmem_limit_bytes=vmem_limit),
    )(qh, kh, vh, mask_i8, wo_h, bo)

    return x, attn


# ---------------------------------------------------------------------------
# Pure-JAX f32 reference (mirrors the PyTorch module) and test harness
# ---------------------------------------------------------------------------
def _reference(query, key, value, params, *, n_heads, mask=None):
    B, Sq, H = query.shape
    d = H // n_heads
    lin = lambda x, w, b: x @ w.T + b
    Q = lin(query, params["wq"], params["bq"]).reshape(B, Sq, n_heads, d).transpose(0, 2, 1, 3)
    K = lin(key, params["wk"], params["bk"]).reshape(B, -1, n_heads, d).transpose(0, 2, 1, 3)
    V = lin(value, params["wv"], params["bv"]).reshape(B, -1, n_heads, d).transpose(0, 2, 1, 3)
    energy = jnp.einsum("bhqd,bhkd->bhqk", Q, K) / math.sqrt(d)
    if mask is not None:
        energy = jnp.where(mask == 0, -1e10, energy)
    attn = jax.nn.softmax(energy, axis=-1)
    x = jnp.einsum("bhqk,bhkd->bhqd", attn, V)
    x = x.transpose(0, 2, 1, 3).reshape(B, Sq, H)
    x = x @ params["wo"].T + params["bo"]
    return x, attn


def init_params(key, hid_dim):
    """Deterministic synthetic parameters (shapes match nn.Linear(hid, hid))."""
    ks = jax.random.split(key, 8)
    std = 1.0 / math.sqrt(hid_dim)
    mk = lambda k, shape: (jax.random.uniform(k, shape, jnp.float32,
                                              minval=-1.0, maxval=1.0) * std)
    return {
        "wq": mk(ks[0], (hid_dim, hid_dim)), "bq": mk(ks[1], (hid_dim,)),
        "wk": mk(ks[2], (hid_dim, hid_dim)), "bk": mk(ks[3], (hid_dim,)),
        "wv": mk(ks[4], (hid_dim, hid_dim)), "bv": mk(ks[5], (hid_dim,)),
        "wo": mk(ks[6], (hid_dim, hid_dim)), "bo": mk(ks[7], (hid_dim,)),
    }


if __name__ == "__main__":
    B, S, H, N_HEADS = 2, 8, 32, 4

    root = jax.random.PRNGKey(0)
    kp, kq, kk, kv = jax.random.split(root, 4)
    params = init_params(kp, H)

    query = jax.random.normal(kq, (B, S, H), jnp.float32)
    key_in = jax.random.normal(kk, (B, S, H), jnp.float32)
    value = jax.random.normal(kv, (B, S, H), jnp.float32)

    # --- Path 1: cross-attention (separate projections), no mask ----------
    x, attn = multi_head_attention(query, key_in, value, params,
                                   n_heads=N_HEADS, mask=None)
    jax.block_until_ready((x, attn))
    assert x.shape == (B, S, H)
    assert attn.shape == (B, N_HEADS, S, S)
    x_ref, attn_ref = _reference(query, key_in, value, params, n_heads=N_HEADS)
    assert float(jnp.max(jnp.abs(x - x_ref))) < 0.08
    assert float(jnp.max(jnp.abs(attn.astype(jnp.float32) - attn_ref))) < 0.02

    # --- Path 2: self-attention (fused QKV projection) + causal mask ------
    causal = jnp.tril(jnp.ones((S, S), jnp.int32))[None, None]
    x2, attn2 = multi_head_attention(query, query, query, params,
                                     n_heads=N_HEADS, mask=causal)
    jax.block_until_ready((x2, attn2))
    x2_ref, attn2_ref = _reference(query, query, query, params,
                                   n_heads=N_HEADS, mask=causal)
    assert float(jnp.max(jnp.abs(x2 - x2_ref))) < 0.08
    assert float(jnp.max(jnp.abs(attn2.astype(jnp.float32) - attn2_ref))) < 0.02

    print("KERNEL_OK")
</pallas_src>

<mosaic_0001>
module attributes {stable_mosaic.version = 11 : i64} {
  func.func @_proj_heads_kernel(%arg0: i32, %arg1: i32, %arg2: memref<1x8x32xf32, #tpu.memory_space<vmem>>, %arg3: memref<32x32xbf16, #tpu.memory_space<vmem>>, %arg4: memref<1x32xf32, #tpu.memory_space<vmem>>, %arg5: memref<1x4x8x8xbf16, #tpu.memory_space<vmem>>) attributes {dimension_semantics = [#tpu.dimension_semantics<parallel>, #tpu.dimension_semantics<parallel>], iteration_bounds = array<i64: 2, 1>, scalar_prefetch = 0 : i64, scratch_operands = 0 : i64, tpu.core_type = #tpu.core_type<tc>, window_params = [{transform_indices = @transform_0, window_bounds = array<i64: 1, 8, 32>}, {pipeline_mode = #tpu.pipeline_mode<synchronous>, transform_indices = @transform_1, window_bounds = array<i64: 32, 32>}, {pipeline_mode = #tpu.pipeline_mode<synchronous>, transform_indices = @transform_2, window_bounds = array<i64: 1, 32>}, {transform_indices = @transform_3, window_bounds = array<i64: 1, 4, 8, 8>}]} {
    %c0 = arith.constant 0 : index
    %c0_0 = arith.constant 0 : index
    %c0_1 = arith.constant 0 : index
    %0 = vector.load %arg2[%c0, %c0_0, %c0_1] : memref<1x8x32xf32, #tpu.memory_space<vmem>>, vector<1x8x32xf32>
    %1 = vector.shape_cast %0 : vector<1x8x32xf32> to vector<8x32xf32>
    %2 = arith.truncf %1 : vector<8x32xf32> to vector<8x32xbf16>
    %c0_2 = arith.constant 0 : index
    %c0_3 = arith.constant 0 : index
    %3 = vector.load %arg3[%c0_2, %c0_3] : memref<32x32xbf16, #tpu.memory_space<vmem>>, vector<32x32xbf16>
    %cst = arith.constant dense<0.000000e+00> : vector<8x32xf32>
    %4 = tpu.matmul %2, %3, %cst {dimension_numbers = #tpu.dot_dimension_numbers<[1], [0], [0], [1], [0, 0, 1, 1], [], []>} : vector<8x32xbf16>, vector<32x32xbf16>, vector<8x32xf32> -> vector<8x32xf32>
    %c0_4 = arith.constant 0 : index
    %c0_5 = arith.constant 0 : index
    %5 = vector.load %arg4[%c0_4, %c0_5] : memref<1x32xf32, #tpu.memory_space<vmem>>, vector<1x32xf32>
    %6 = vector.broadcast %5 : vector<1x32xf32> to vector<8x32xf32>
    %7 = arith.addf %4, %6 : vector<8x32xf32>
    %8 = arith.truncf %7 : vector<8x32xf32> to vector<8x32xbf16>
    %9 = vector.extract_strided_slice %8 {offsets = [0, 0], sizes = [8, 8], strides = [1, 1]} : vector<8x32xbf16> to vector<8x8xbf16>
    %c0_6 = arith.constant 0 : index
    %c0_7 = arith.constant 0 : index
    %c0_8 = arith.constant 0 : index
    %c0_9 = arith.constant 0 : index
    %10 = vector.load %arg5[%c0_6, %c0_7, %c0_8, %c0_9] : memref<1x4x8x8xbf16, #tpu.memory_space<vmem>>, vector<1x1x8x8xbf16>
    %11 = vector.shape_cast %10 : vector<1x1x8x8xbf16> to vector<8x8xbf16>
    %12 = vector.shape_cast %9 : vector<8x8xbf16> to vector<1x1x8x8xbf16>
    tpu.vector_store %arg5[%c0_6, %c0_7, %c0_8, %c0_9], %12 {strides = array<i32>} : memref<1x4x8x8xbf16, #tpu.memory_space<vmem>>, vector<1x1x8x8xbf16>,
    %13 = vector.extract_strided_slice %8 {offsets = [0, 8], sizes = [8, 8], strides = [1, 1]} : vector<8x32xbf16> to vector<8x8xbf16>
    %c0_10 = arith.constant 0 : index
    %c1 = arith.constant 1 : index
    %c0_11 = arith.constant 0 : index
    %c0_12 = arith.constant 0 : index
    %14 = vector.load %arg5[%c0_10, %c1, %c0_11, %c0_12] : memref<1x4x8x8xbf16, #tpu.memory_space<vmem>>, vector<1x1x8x8xbf16>
    %15 = vector.shape_cast %14 : vector<1x1x8x8xbf16> to vector<8x8xbf16>
    %16 = vector.shape_cast %13 : vector<8x8xbf16> to vector<1x1x8x8xbf16>
    tpu.vector_store %arg5[%c0_10, %c1, %c0_11, %c0_12], %16 {strides = array<i32>} : memref<1x4x8x8xbf16, #tpu.memory_space<vmem>>, vector<1x1x8x8xbf16>,
    %17 = vector.extract_strided_slice %8 {offsets = [0, 16], sizes = [8, 8], strides = [1, 1]} : vector<8x32xbf16> to vector<8x8xbf16>
    %c0_13 = arith.constant 0 : index
    %c2 = arith.constant 2 : index
    %c0_14 = arith.constant 0 : index
    %c0_15 = arith.constant 0 : index
    %18 = vector.load %arg5[%c0_13, %c2, %c0_14, %c0_15] : memref<1x4x8x8xbf16, #tpu.memory_space<vmem>>, vector<1x1x8x8xbf16>
    %19 = vector.shape_cast %18 : vector<1x1x8x8xbf16> to vector<8x8xbf16>
    %20 = vector.shape_cast %17 : vector<8x8xbf16> to vector<1x1x8x8xbf16>
    tpu.vector_store %arg5[%c0_13, %c2, %c0_14, %c0_15], %20 {strides = array<i32>} : memref<1x4x8x8xbf16, #tpu.memory_space<vmem>>, vector<1x1x8x8xbf16>,
    %21 = vector.extract_strided_slice %8 {offsets = [0, 24], sizes = [8, 8], strides = [1, 1]} : vector<8x32xbf16> to vector<8x8xbf16>
    %c0_16 = arith.constant 0 : index
    %c3 = arith.constant 3 : index
    %c0_17 = arith.constant 0 : index
    %c0_18 = arith.constant 0 : index
    %22 = vector.load %arg5[%c0_16, %c3, %c0_17, %c0_18] : memref<1x4x8x8xbf16, #tpu.memory_space<vmem>>, vector<1x1x8x8xbf16>
    %23 = vector.shape_cast %22 : vector<1x1x8x8xbf16> to vector<8x8xbf16>
    %24 = vector.shape_cast %21 : vector<8x8xbf16> to vector<1x1x8x8xbf16>
    tpu.vector_store %arg5[%c0_16, %c3, %c0_17, %c0_18], %24 {strides = array<i32>} : memref<1x4x8x8xbf16, #tpu.memory_space<vmem>>, vector<1x1x8x8xbf16>,
    return
  }
  func.func @transform_0(%arg0: i32, %arg1: i32) -> (i32, i32, i32) {
    %c0_i32 = arith.constant 0 : i32
    %c0_i32_0 = arith.constant 0 : i32
    return %arg0, %arg1, %c0_i32 : i32, i32, i32
  }
  func.func @transform_1(%arg0: i32, %arg1: i32) -> (i32, i32) {
    %c0_i32 = arith.constant 0 : i32
    %c0_i32_0 = arith.constant 0 : i32
    %c0_i32_1 = arith.constant 0 : i32
    return %c0_i32, %c0_i32_0 : i32, i32
  }
  func.func @transform_2(%arg0: i32, %arg1: i32) -> (i32, i32) {
    %c0_i32 = arith.constant 0 : i32
    %c0_i32_0 = arith.constant 0 : i32
    %c0_i32_1 = arith.constant 0 : i32
    return %c0_i32, %c0_i32_0 : i32, i32
  }
  func.func @transform_3(%arg0: i32, %arg1: i32) -> (i32, i32, i32, i32) {
    %c0_i32 = arith.constant 0 : i32
    %c0_i32_0 = arith.constant 0 : i32
    %c0_i32_1 = arith.constant 0 : i32
    return %arg0, %c0_i32, %arg1, %c0_i32_0 : i32, i32, i32, i32
  }
}

</mosaic_0001>

<bundles_post_ra>
// kernel: tpu_custom_call.1
= control target key start
LH: loop header
LB: loop body
LE: loop exit
PB: predicated region body
PF: predicated region fallthrough
CT: control target
= control target key end

     0   :  { %8 = vsyncpa [#allocation3], 0  ;;  %s831_s0 = inlined_call_operand.hbm [shape: f32[2,8,32], index: 0, kind: input, shape index: {}]   ;;  %s832_s1 = inlined_call_operand.hbm [shape: bf16[32,32], index: 1, kind: input, shape index: {}]   ;;  %s833_s2 = inlined_call_operand.vmem [shape: f32[1,32], index: 2, kind: input, shape index: {}]   ;;  %s834_s3 = inlined_call_operand.hbm [shape: bf16[2,4,8,8], index: 3, kind: output, shape index: {}]  }
   0x1   :  { %10 = vsyncpa [#allocation3 + $0x1], 0 }
   0x2   :  { %11 = vsyncpa [#allocation6], 0 }
   0x3   :  { %12 = vsyncpa [#allocation4], 0 }
   0x4   :  { %14 = vsyncpa [#allocation4 + $0x1], 0  ;;  %s680_s12 = smov 0   ;;  %s682_s13 = smov 0  }
   0x5   :  { %s684_s14 = smov 0   ;;  %s686_s15 = smov 0  }
   0x6   :  { %s688_s16 = smov 0   ;;  %s690_s17 = smov 0  }
   0x7 LB: > { %s392_s18 = sadd.s32 4294967295, %s650_s17   ;;  %p394_p0 = scmp.ge.s32.totalorder %s650_s17, 1  ;;  %s650_s17 = sphi %s690_s17, %s20_s17   ;;  %s646_s16 = sphi %s688_s16, %s845_s16   ;;  %s642_s15 = sphi %s686_s15, %s844_s15   ;;  %s638_s14 = sphi %s684_s14, %s843_s14   ;;  %s634_s13 = sphi %s682_s13, %s842_s13   ;;  %s630_s12 = sphi %s680_s12, %s841_s12  }
   0x8   : > { %p712_p1 = scmp.eq.s32.totalorder %s392_s18, 0  ;;  %p135_p2 = scmp.lt.s32.totalorder %s650_s17, 3 }
   0x9   : > { %s146_s22 = sshll.u32 %s832_s1, 4  ;;  %s652_s24 = smov [#allocation5]   ;;  %s147_s22 = int_to_ptr.hbm [resolvable:$true] %s146_s22 }
   0xa   : > { %p720_p3 = pnand %p394_p0, %p135_p2  ;;  %s148_s25 = sshll.u32 %s652_s24, 4  ;;  %s149_s25 = int_to_ptr.vmem [resolvable:$true] %s148_s25 }
   0xb   : > { %p396_p6 = scmp.ge.s32.totalorder %s650_s17, 2  ;;  %s653_s26 = smov 64  }
   0xc   : > { %p431_p4 = pneg %p720_p3  ;;  %s654_s27 = smov 4  }
   0xd   : > { %s393_s28 = sadd.s32 4294967294, %s650_s17   ;;  %s32_s29 = sadd.s32 1, %s646_s16 }
   0xe   : > { %p432_p5 = pnand %p431_p4, %p712_p1  ;;  %s41_s30 = sadd.s32 1, %s638_s14 }
   0xf   : > { %p34_p7 = scmp.ge.s32.totalorder %s32_s29, 2  ;;  %p48_p8 = scmp.ne.s32.totalorder %s638_s14, %s634_s13 }
  0x10   : > { %434 = dma.hbm_to_vmem [thread:$0]  (!%p432_p5), %s147_s22, 256, %s149_s25, [#allocation6], %s653_s26, %s653_s26, %s654_s27  }
  0x11   : > { %p49_p9 = scmp.eq.s32.totalorder %s650_s17, 0  ;;  %p54_p10 = scmp.ne.s32.totalorder %s634_s13, %s630_s12 }
  0x12   : > { %s847_s29 = smov (%p34_p7, %s32_s29), 0  ;;  %p122_p13 = scmp.eq.s32.totalorder %s392_s18, 1 }
  0x13   : > { %p739_p11 = por %p49_p9, %p48_p8  ;;  %p745_p12 = por %p712_p1, %p54_p10 }
  0x14   : > { %s36_s6 = ssub.s32 %s646_s16, %s847_s29  ;;  %p128_p2 = scmp.eq.s32.totalorder %s393_s28, 1 }
  0x15   : > { %p39_p0 = scmp.eq.s32.totalorder %s36_s6, 0  ;;  %p751_p4 = por %p122_p13, %p48_p8 }
  0x16   : > { %p444_p5 = scmp.lt.s32.totalorder %s650_s17, 2  ;;  %p759_p7 = por %p128_p2, %p54_p10 }
  0x17   : > { %s757_s8 = scalar_select %p39_p0, %s638_s14, %s41_s30  }
  0x18   : > { %s165_s10 = sand.u32 1, %s638_s14   ;;  %s398_s20 = sshll.u32 %s646_s16, 3 }
  0x19   : > { %s397_s11 = sshll.u32 %s165_s10, 3  ;;  %s174_s18 = scalar_lea.hbm %s831_s0, %s398_s20 }
  0x1a   : > { %s169_s24 = scalar_lea.vmem [#allocation2], %s397_s11  ;;  %s176_s26 = sshll.u32 %s174_s18, 4  ;;  %s177_s26 = int_to_ptr.hbm [resolvable:$true] %s176_s26 }
  0x1b   : > { %s178_s25 = sshll.u32 %s169_s24, 4  ;;  %p436_p8 = pnand %p444_p5, %p739_p11  ;;  %s179_s25 = int_to_ptr.vmem [resolvable:$true] %s178_s25 }
  0x1c   : > { %s166_s27 = scalar_lea.sflag [#allocation3], %s165_s10  ;;  %187 = sbr.rel (%p720_p3) target bundleno = 301 (0x12d), region = 32 }
  0x1d   : > { %438 = dma.hbm_to_vmem [thread:$0]  (!%p436_p8), %s177_s26, 128, %s179_s25, %s166_s27  }
  0x1e   : > { %s773_s28 = sand.u32 (!%p720_p3), 1, %s634_s13  }
  0x1f   : > { %s400_s30 = sshll.u32 (!%p720_p3), %s773_s28, 3  ;;  %s190_s6 = scalar_lea.sflag (!%p720_p3), [#allocation3], %s773_s28 }
  0x20   : > { %s193_s11 = scalar_lea.vmem (!%p720_p3), [#allocation2], %s400_s30 }
  0x21   : > { %617 = dma.done.wait (%p745_p12), %s190_s6, 128  }
  0x22   : > { %619 = vsyncadd (%p745_p12), %s190_s6, 4294967168 }
  0x23   : > { %621 = dma.done.wait (%p712_p1), [#allocation6], 256  }
  0x24   : > { %623 = vsyncadd (%p712_p1), [#allocation6], 4294967040  ;;  %v421_v0 = vld [vmem:[#allocation5 + $0x8] sm:$0xff]  ;;  %v420_v1 = vld [vmem:[#allocation5] sm:$0xff]  ;;  %vm245_vm0 = vcmask 261120   ;;  %s402_s5 = sshll.u32 %s773_s28, 4 }
  0x25   : > { %255 = vmatpush.bf16.msra.mxu0 %v421_v0  ;;  %v223_v2 = vld [vmem:[%s193_s11] sm:$0xff]  ;;  %vm263_vm1 = vcmask 60416   ;;  %s655_s19 = smov 104   ;;  %s656_s10 = smov 120  }
  0x26   : > { %v224_v3 = vpack.c.bf16 %v223_v2, %v223_v2  ;;  %v503_v4 = vld [vmem:[%s833_s2] ss:$0 sm:$0xff]  ;;  %s221_s20 = scalar_lea.vmem [#allocation7], %s402_s5  ;;  %s657_s21 = smov 112  }
  0x27   : > { %s422_s22 = sshll.u32 %s642_s15, 4  ;;  %s295_s26 = sshll.u32 %s221_s20, 4  ;;  %s296_s26 = int_to_ptr.vmem [resolvable:$true] %s295_s26 }
  0x28   : > { %s294_s25 = scalar_lea.hbm %s834_s3, %s422_s22  ;;  %s282_s30 = scalar_lea.sflag [#allocation4], %s773_s28 }
  0x29   : > { %256 = vmatpush.bf16.msra.mxu0 %v420_v1  ;;  %s297_s27 = sshll.u32 %s294_s25, 4  ;;  %s584_s4 = scalar_lea.hbm %s834_s3, 32  ;;  %s298_s27 = int_to_ptr.hbm [resolvable:$true] %s297_s27 }
  0x2a   : > { %s578_s15 = sshra.s32 %s298_s27, 4  ;;  %s579_s15 = int_to_ptr.hbm [resolvable:$true] %s578_s15 }
  0x2b   : > { %s580_s6 = scalar_lea.hbm %s579_s15, 16  ;;  %p585_p10 = scmp.lt.s32.totalorder %s579_s15, %s834_s3 }
  0x2c   : > { %411 = vmatmul.msk.bf16.vlgmr.msra.gmra.mxu0 %vm245_vm0, %v224_v3  ;;  %p581_p1 = scmp.ne.s32.totalorder %s579_s15, %s580_s6  ;;  %p586_p11 = scmp.lt.s32.totalorder %s584_s4, %s580_s6 }
  0x2e   : > { %p582_p3 = pnand %p581_p1, %p751_p4  ;;  %p587_p12 = por %p586_p11, %p585_p10 }
  0x30   : > { %p583_p9 = pneg %p582_p3 }
  0x32   : > { %p588_p13 = pnand %p587_p12, %p583_p9 }
  0xa9   : > { %v258_v5 = vpop.f32.mrf.mxu0 }
  0xaa   : > { %v259_v6 = vadd.f32 %v503_v4, %v258_v5 }
  0xac   : > { %v262_v7 = vpack.c.bf16 %v259_v6, %v259_v6 }
  0xae   : > { %276 = vrot.lane.b32.xlu1 %v262_v7, %s655_s19  ;;  %266 = vrot.lane.b32.xlu0 %v262_v7, %s656_s10  ;;  %264 = vst.msk [vmem:[%s221_s20] sm:$0xf] %vm263_vm1, %v262_v7 }
  0xb1   : > { %v260_v8 = vpop.f32.mrf.mxu0 }
  0xb6   : > { %271 = vrot.lane.b32.xlu0 %v262_v7, %s657_s21 }
 0x120   : > { %v277_v9 = vpop.permute.xlu1 %276  ;;  %v267_v10 = vpop.permute.xlu0 %266 }
 0x121   : > { %414 = vst.msk [vmem:[%s221_s20 + $0xc] sm:$0xf] %vm263_vm1, %v277_v9 }
 0x122   : > { %412 = vst.msk [vmem:[%s221_s20 + $0x4] sm:$0xf] %vm263_vm1, %v267_v10 }
 0x128   : > { %v272_v11 = vpop.permute.xlu0 %271 }
 0x129   : > { %413 = vst.msk [vmem:[%s221_s20 + $0x8] sm:$0xf] %vm263_vm1, %v272_v11 }
 0x12a   : > { %591 = shalt.err (!%p588_p13)
}
 0x12b   : > { %s658_s28 = smov 64   ;;  %s659_s10 = smov 4  }
 0x12c   : > { %429 = dma.vmem_to_hbm [thread:$0]  (%p751_p4), %s296_s26, 256, %s298_s27, %s282_s30, %s658_s28, %s658_s28, %s659_s10  }
 0x12d PF: > { %s312_s20 = sand.u32 1, %s630_s12   ;;  %p440_p0 = pnand %p396_p6, %p759_p7 }
 0x12e   : > { %s313_s21 = scalar_lea.sflag [#allocation4], %s312_s20 }
 0x12f   : > { %p441_p2 = pneg %p440_p0 }
 0x131   : > { %625 = dma.done.wait (%p441_p2), %s313_s21, 256  }
 0x132   : > { %627 = vsyncadd (%p441_p2), %s313_s21, 4294967040  ;;  %s20_s17 = sadd.s32 1, %s650_s17   ;;  %s841_s12 = smov %s634_s13 }
 0x133   : > { %p17_p5 = scmp.ge.s32.totalorder %s20_s17, 4   ;;  %s842_s13 = smov %s638_s14 }
 0x134   : > { %s843_s14 = smov %s757_s8  ;;  %s844_s15 = smov %s646_s16 }
 0x135   : > { %s845_s16 = smov %s847_s29  ;;  %19 = sbr.rel (!%p17_p5) target bundleno = 7 (0x7), region = 84 }
 0x13a   :  { %319 = vsyncpa [#allocation3], 1 }
 0x13b   :  { %321 = vsyncpa [#allocation3 + $0x1], 1 }
 0x13c   :  { %322 = vsyncpa [#allocation6], 1 }
 0x13d   :  { %323 = vsyncpa [#allocation4], 1 }
 0x13e   :  { %325 = vsyncpa [#allocation4 + $0x1], 1 }

</bundles_post_ra>
